<compile_context>
chip_gen: v5e
topology: v5e:2x2
jax: 0.10.0
libtpu: 0.0.40
codegen_flags: <defaults>
</compile_context>

<pallas_src>
import functools

import jax
import jax.numpy as jnp
from jax.experimental import pallas as pl
from jax.experimental.pallas import tpu as pltpu

HIDDEN = 64        # hidden width of the module (fc1 out / fc3 in)
TILE_B_MAX = 512   # max batch rows per grid step (sweepable; VMEM cost is tiny)


def _round_up(x, m):
    return ((x + m - 1) // m) * m


def actor_kernel(x_ref, w1_ref, b1_ref, w3_ref, b3_ref, out_ref):
    # x_ref:   (TILE_B, input_size)
    # w1_ref:  (input_size, HIDDEN)   b1_ref: (1, HIDDEN)
    # w3_ref:  (HIDDEN, output_size)  b3_ref: (1, output_size)
    # out_ref: (TILE_B, output_size)
    x = x_ref[...]

    # fc1 + ReLU
    h = jnp.dot(x, w1_ref[...], preferred_element_type=jnp.float32) + b1_ref[...]
    h = jnp.maximum(h, 0.0)

    # fc3 (contraction over the real 64 hidden units only)
    logits = jnp.dot(h, w3_ref[...], preferred_element_type=jnp.float32) + b3_ref[...]

    # per-row softmax over the action axis (exact divide so rows sum to 1)
    m = jnp.max(logits, axis=-1, keepdims=True)
    e = jnp.exp(logits - m)
    s = jnp.sum(e, axis=-1, keepdims=True)
    out_ref[...] = e / s


@jax.jit
def actor_forward_batched(states, params):
    """states: (B, input_size) -> action_probs: (B, output_size) f32.

    Softmax is taken per row over the action axis (the Actor's intent).
    Pad -> pallas_call -> tail-slice all run under one jit so they fuse.
    """
    w1, b1, w3, b3 = params
    states = states.astype(jnp.float32)
    b, input_size = states.shape
    hidden = w1.shape[1]
    output_size = w3.shape[1]

    w1 = w1.astype(jnp.float32)
    b1 = b1.reshape(1, hidden).astype(jnp.float32)
    w3 = w3.astype(jnp.float32)
    b3 = b3.reshape(1, output_size).astype(jnp.float32)

    # Adaptive batch tile: big tiles amortize per-grid-step overhead, tiny
    # batches only pad up to a multiple of 8 (sublane granularity).
    tile_b = min(TILE_B_MAX, _round_up(b, 8))
    padded_b = _round_up(b, tile_b)
    if padded_b != b:
        states = jnp.pad(states, ((0, padded_b - b), (0, 0)))

    grid = (padded_b // tile_b,)

    out = pl.pallas_call(
        actor_kernel,
        out_shape=jax.ShapeDtypeStruct((padded_b, output_size), jnp.float32),
        grid=grid,
        in_specs=[
            # state tile streams per grid step
            pl.BlockSpec((tile_b, input_size), lambda i: (i, 0)),
            # weights/biases: constant index_map -> DMA'd once, VMEM-resident
            pl.BlockSpec((input_size, hidden), lambda i: (0, 0)),
            pl.BlockSpec((1, hidden), lambda i: (0, 0)),
            pl.BlockSpec((hidden, output_size), lambda i: (0, 0)),
            pl.BlockSpec((1, output_size), lambda i: (0, 0)),
        ],
        # narrow output: only the real action columns are written to HBM
        out_specs=pl.BlockSpec((tile_b, output_size), lambda i: (i, 0)),
        compiler_params=pltpu.CompilerParams(
            dimension_semantics=("parallel",),
        ),
    )(states, w1, b1, w3, b3)

    return out[:b]


def actor_forward(state, params):
    """state: (input_size,) -> action_probs: (output_size,).

    Exact PyTorch module semantics: fc1 -> ReLU -> fc3 -> Softmax(dim=0) on a
    1-D state.  (B=1 is launch-overhead bound; use the batched entry point for
    throughput.)
    """
    return actor_forward_batched(state.reshape(1, -1), params)[0]


def init_actor_params(key, input_size, output_size):
    """nn.Linear default init: U(-1/sqrt(fan_in), +1/sqrt(fan_in))."""
    k1, k2, k3, k4 = jax.random.split(key, 4)
    bnd1 = 1.0 / jnp.sqrt(jnp.float32(input_size))
    bnd3 = 1.0 / jnp.sqrt(jnp.float32(HIDDEN))
    # stored as (in_features, out_features) so the kernel computes x @ W + b
    w1 = jax.random.uniform(k1, (input_size, HIDDEN), jnp.float32, -bnd1, bnd1)
    b1 = jax.random.uniform(k2, (HIDDEN,), jnp.float32, -bnd1, bnd1)
    w3 = jax.random.uniform(k3, (HIDDEN, output_size), jnp.float32, -bnd3, bnd3)
    b3 = jax.random.uniform(k4, (output_size,), jnp.float32, -bnd3, bnd3)
    return w1, b1, w3, b3


if __name__ == "__main__":
    input_size = 16   # state dimension
    output_size = 8   # number of discrete actions
    batch = 4         # small demo batch

    key = jax.random.PRNGKey(0)
    pkey, skey = jax.random.split(key)
    params = init_actor_params(pkey, input_size, output_size)
    states = jax.random.normal(skey, (batch, input_size), jnp.float32)

    # Batched forward through the Pallas kernel.
    probs = actor_forward_batched(states, params)
    jax.block_until_ready(probs)

    # Pure-JAX reference of the same forward pass.
    w1, b1, w3, b3 = params
    h_ref = jnp.maximum(states @ w1 + b1, 0.0)
    logits_ref = h_ref @ w3 + b3
    probs_ref = jax.nn.softmax(logits_ref, axis=-1)

    assert probs.shape == (batch, output_size)
    assert jnp.allclose(probs, probs_ref, atol=1e-4), (probs, probs_ref)
    assert jnp.allclose(jnp.sum(probs, axis=-1), 1.0, atol=1e-4)

    # Single-state path (exact PyTorch-module semantics: Softmax(dim=0) on 1-D input).
    single = actor_forward(states[0], params)
    jax.block_until_ready(single)
    single_ref = jax.nn.softmax(jnp.maximum(states[0] @ w1 + b1, 0.0) @ w3 + b3, axis=0)
    assert single.shape == (output_size,)
    assert jnp.allclose(single, single_ref, atol=1e-4), (single, single_ref)
    assert jnp.allclose(jnp.sum(single), 1.0, atol=1e-4)

    print("KERNEL_OK")
</pallas_src>

<mosaic_0001>
module attributes {stable_mosaic.version = 11 : i64} {
  func.func @actor_kernel(%arg0: i32, %arg1: memref<8x16xf32, #tpu.memory_space<vmem>>, %arg2: memref<16x64xf32, #tpu.memory_space<vmem>>, %arg3: memref<1x64xf32, #tpu.memory_space<vmem>>, %arg4: memref<64x8xf32, #tpu.memory_space<vmem>>, %arg5: memref<1x8xf32, #tpu.memory_space<vmem>>, %arg6: memref<8x8xf32, #tpu.memory_space<vmem>>) attributes {dimension_semantics = [#tpu.dimension_semantics<parallel>], iteration_bounds = array<i64: 1>, scalar_prefetch = 0 : i64, scratch_operands = 0 : i64, tpu.core_type = #tpu.core_type<tc>, window_params = [{transform_indices = @transform_0, window_bounds = array<i64: 8, 16>}, {pipeline_mode = #tpu.pipeline_mode<synchronous>, transform_indices = @transform_1, window_bounds = array<i64: 16, 64>}, {pipeline_mode = #tpu.pipeline_mode<synchronous>, transform_indices = @transform_2, window_bounds = array<i64: 1, 64>}, {pipeline_mode = #tpu.pipeline_mode<synchronous>, transform_indices = @transform_3, window_bounds = array<i64: 64, 8>}, {pipeline_mode = #tpu.pipeline_mode<synchronous>, transform_indices = @transform_4, window_bounds = array<i64: 1, 8>}, {transform_indices = @transform_5, window_bounds = array<i64: 8, 8>}]} {
    %c0 = arith.constant 0 : index
    %c0_0 = arith.constant 0 : index
    %0 = vector.load %arg1[%c0, %c0_0] : memref<8x16xf32, #tpu.memory_space<vmem>>, vector<8x16xf32>
    %c0_1 = arith.constant 0 : index
    %c0_2 = arith.constant 0 : index
    %1 = vector.load %arg2[%c0_1, %c0_2] : memref<16x64xf32, #tpu.memory_space<vmem>>, vector<16x64xf32>
    %cst = arith.constant dense<0.000000e+00> : vector<8x64xf32>
    %2 = tpu.matmul %0, %1, %cst {dimension_numbers = #tpu.dot_dimension_numbers<[1], [0], [0], [1], [0, 0, 1, 1], [], []>} : vector<8x16xf32>, vector<16x64xf32>, vector<8x64xf32> -> vector<8x64xf32>
    %c0_3 = arith.constant 0 : index
    %c0_4 = arith.constant 0 : index
    %3 = vector.load %arg3[%c0_3, %c0_4] : memref<1x64xf32, #tpu.memory_space<vmem>>, vector<1x64xf32>
    %4 = vector.broadcast %3 : vector<1x64xf32> to vector<8x64xf32>
    %5 = arith.addf %2, %4 : vector<8x64xf32>
    %cst_5 = arith.constant 0.000000e+00 : f32
    %6 = vector.broadcast %cst_5 : f32 to vector<8x64xf32>
    %7 = arith.maximumf %5, %6 : vector<8x64xf32>
    %c0_6 = arith.constant 0 : index
    %c0_7 = arith.constant 0 : index
    %8 = vector.load %arg4[%c0_6, %c0_7] : memref<64x8xf32, #tpu.memory_space<vmem>>, vector<64x8xf32>
    %cst_8 = arith.constant dense<0.000000e+00> : vector<8x8xf32>
    %9 = tpu.matmul %7, %8, %cst_8 {dimension_numbers = #tpu.dot_dimension_numbers<[1], [0], [0], [1], [0, 0, 1, 1], [], []>} : vector<8x64xf32>, vector<64x8xf32>, vector<8x8xf32> -> vector<8x8xf32>
    %c0_9 = arith.constant 0 : index
    %c0_10 = arith.constant 0 : index
    %10 = vector.load %arg5[%c0_9, %c0_10] : memref<1x8xf32, #tpu.memory_space<vmem>>, vector<1x8xf32>
    %11 = vector.broadcast %10 : vector<1x8xf32> to vector<8x8xf32>
    %12 = arith.addf %9, %11 : vector<8x8xf32>
    %cst_11 = arith.constant dense<0xFF800000> : vector<8xf32>
    %13 = vector.multi_reduction <maximumf>, %12, %cst_11 [1] : vector<8x8xf32> to vector<8xf32>
    %14 = vector.shape_cast %13 : vector<8xf32> to vector<8x1xf32>
    %15 = vector.broadcast %14 : vector<8x1xf32> to vector<8x8xf32>
    %16 = arith.subf %12, %15 : vector<8x8xf32>
    %17 = math.exp %16 : vector<8x8xf32>
    %cst_12 = arith.constant dense<0.000000e+00> : vector<8xf32>
    %18 = vector.multi_reduction <add>, %17, %cst_12 [1] : vector<8x8xf32> to vector<8xf32>
    %19 = vector.shape_cast %18 : vector<8xf32> to vector<8x1xf32>
    %20 = vector.broadcast %19 : vector<8x1xf32> to vector<8x8xf32>
    %21 = arith.divf %17, %20 : vector<8x8xf32>
    %c0_13 = arith.constant 0 : index
    %c0_14 = arith.constant 0 : index
    %22 = vector.load %arg6[%c0_13, %c0_14] : memref<8x8xf32, #tpu.memory_space<vmem>>, vector<8x8xf32>
    tpu.vector_store %arg6[%c0_13, %c0_14], %21 {strides = array<i32>} : memref<8x8xf32, #tpu.memory_space<vmem>>, vector<8x8xf32>,
    return
  }
  func.func @transform_0(%arg0: i32) -> (i32, i32) {
    %c0_i32 = arith.constant 0 : i32
    %c0_i32_0 = arith.constant 0 : i32
    return %arg0, %c0_i32 : i32, i32
  }
  func.func @transform_1(%arg0: i32) -> (i32, i32) {
    %c0_i32 = arith.constant 0 : i32
    %c0_i32_0 = arith.constant 0 : i32
    %c0_i32_1 = arith.constant 0 : i32
    return %c0_i32, %c0_i32_0 : i32, i32
  }
  func.func @transform_2(%arg0: i32) -> (i32, i32) {
    %c0_i32 = arith.constant 0 : i32
    %c0_i32_0 = arith.constant 0 : i32
    %c0_i32_1 = arith.constant 0 : i32
    return %c0_i32, %c0_i32_0 : i32, i32
  }
  func.func @transform_3(%arg0: i32) -> (i32, i32) {
    %c0_i32 = arith.constant 0 : i32
    %c0_i32_0 = arith.constant 0 : i32
    %c0_i32_1 = arith.constant 0 : i32
    return %c0_i32, %c0_i32_0 : i32, i32
  }
  func.func @transform_4(%arg0: i32) -> (i32, i32) {
    %c0_i32 = arith.constant 0 : i32
    %c0_i32_0 = arith.constant 0 : i32
    %c0_i32_1 = arith.constant 0 : i32
    return %c0_i32, %c0_i32_0 : i32, i32
  }
  func.func @transform_5(%arg0: i32) -> (i32, i32) {
    %c0_i32 = arith.constant 0 : i32
    %c0_i32_0 = arith.constant 0 : i32
    return %arg0, %c0_i32 : i32, i32
  }
}

</mosaic_0001>

<bundles_post_ra>
// kernel: actor_forward_batched.1
= control target key start
LH: loop header
LB: loop body
LE: loop exit
PB: predicated region body
PF: predicated region fallthrough
CT: control target
= control target key end

     0   :  { %vm27_vm0 = vcmask 130048   ;;  %vm64_vm1 = vcmask 523264   ;;  %vm88_vm2 = vcmask 64512   ;;  %s201_s1 = inlined_call_operand.vmem [shape: f32[16,64], index: 1, kind: input, shape index: {}]   ;;  %s202_s0 = inlined_call_operand.vmem [shape: f32[8,16], index: 0, kind: input, shape index: {}]   ;;  %s203_s3 = inlined_call_operand.vmem [shape: f32[64,8], index: 3, kind: input, shape index: {}]   ;;  %s204_s2 = inlined_call_operand.vmem [shape: f32[1,64], index: 2, kind: input, shape index: {}]   ;;  %s205_s4 = inlined_call_operand.vmem [shape: f32[1,8], index: 4, kind: input, shape index: {}]   ;;  %s206_s5 = inlined_call_operand.vmem [shape: f32[8,8], index: 5, kind: output, shape index: {}]  }
   0x1   :  { %v22_v0 = vld [vmem:[%s201_s1 + $0x8] sm:$0xff]  ;;  %v21_v1 = vld [vmem:[%s201_s1] sm:$0xff]  ;;  %v59_v3 = vld [vmem:[%s203_s3 + $0x38] sm:$0xff] }
   0x2   :  { %45 = vmatpush.msra.mxu0 %v22_v0  ;;  %v20_v2 = vld [vmem:[%s202_s0] sm:$0xff]  ;;  %v58_v4 = vld [vmem:[%s203_s3 + $0x30] sm:$0xff]  ;;  %76 = vmatpush.msra.mxu1 %v59_v3  ;;  %v57_v5 = vld [vmem:[%s203_s3 + $0x28] sm:$0xff] }
   0x3   :  { %v56_v6 = vld [vmem:[%s203_s3 + $0x20] sm:$0xff]  ;;  %v55_v7 = vld [vmem:[%s203_s3 + $0x18] sm:$0xff]  ;;  %v54_v8 = vld [vmem:[%s203_s3 + $0x10] sm:$0xff] }
   0x4   :  { %46 = vmatpush.msra.mxu0 %v21_v1  ;;  %77 = vmatpush.msra.mxu1 %v58_v4  ;;  %v53_v9 = vld [vmem:[%s203_s3 + $0x8] sm:$0xff]  ;;  %v52_v10 = vld [vmem:[%s203_s3] sm:$0xff] }
   0x5   :  { %118 = vmatmul.msk.f32.vlgmr.msra.gmra.mxu0 %vm27_vm0, %v20_v2  ;;  %v120_v11 = vld [vmem:[%s204_s2] ss:$0 sm:$0xff] }
   0x6   :  { %78 = vmatpush.msra.mxu1 %v57_v5  ;;  %v121_v15 = vld [vmem:[%s205_s4] ss:$0 sm:$0xff] }
   0x8   :  { %79 = vmatpush.msra.mxu1 %v56_v6 }
   0xa   :  { %80 = vmatpush.msra.mxu1 %v55_v7 }
   0xc   :  { %81 = vmatpush.msra.mxu1 %v54_v8 }
   0xe   :  { %82 = vmatpush.msra.mxu1 %v53_v9 }
  0x10   :  { %83 = vmatpush.msra.mxu1 %v52_v10 }
  0x82   :  { %v48_v12 = vpop.f32.mrf.mxu0 }
  0x83   :  { %v49_v13 = vadd.f32 %v120_v11, %v48_v12 }
  0x85   :  { %v51_v14 = vmax.f32 %v49_v13, 0.0 }
  0x87   :  { %119 = vmatmul.msk.f32.vlgmr.msra.gmra.mxu1 %vm64_vm1, %v51_v14 }
 0x104   :  { %v85_v16 = vpop.f32.mrf.mxu1 }
 0x105   :  { %v86_v17 = vadd.f32 %v121_v15, %v85_v16 }
 0x107   :  { %v89_v18 = vsel %vm88_vm2, %v86_v17, -inf }
 0x108   :  { %90 = vmax.xlane.f32.xlu0 %v89_v18 }
 0x17b   :  { %v91_v19 = vpop.xlane.xlu0 %90 }
 0x17c   :  { %v92_v20 = vsub.f32 %v86_v17, %v91_v19 }
 0x17e   :  { %v93_v21 = vmul.f32 1.442695, %v92_v20 }
 0x180   :  { %122 = vpow2.f32 %v93_v21 }
 0x186   :  { %v123_v22 = vpop.eup %122 }
 0x187   :  { %v95_v23 = vsel %vm88_vm2, %v123_v22, 0.0 }
 0x188   :  { %96 = vadd.xlane.f32.xlu0 %v95_v23 }
 0x1fb   :  { %v97_v24 = vpop.xlane.xlu0 %96 }
 0x1fc   :  { %124 = vrcp.f32 %v97_v24  ;;  %v109_v28 = vand.u32 2147483648, %v97_v24  ;;  %v107_v30 = vand.u32 2147483647, %v97_v24  ;;  %vm103_vm4 = vweird.f32 %v97_v24 }
 0x1fe   :  { %v110_v32 = vor.u32 1.1754944e-38, %v109_v28  ;;  %vm108_vm6 = vcmp.eq.f32.partialorder %v107_v30, 8.507059e+37 }
 0x202   :  { %v125_v25 = vpop.eup %124 }
 0x203   :  { %v99_v26 = vmul.f32 %v125_v25, %v97_v24  ;;  %vm104_vm3 = vweird.f32 %v125_v25 }
 0x204   :  { %vm105_vm5 = vmor %vm103_vm4, %vm104_vm3 }
 0x205   :  { %v100_v27 = vsub.f32 1.0, %v99_v26 }
 0x207   :  { %v101_v29 = vmul.f32 %v125_v25, %v100_v27 }
 0x209   :  { %v102_v31 = vadd.f32 %v125_v25, %v101_v29 }
 0x20b   :  { %v106_v33 = vsel %vm105_vm5, %v125_v25, %v102_v31 }
 0x20c   :  { %v111_v34 = vsel %vm108_vm6, %v110_v32, %v106_v33 }
 0x20d   :  { %v112_v35 = vmul.f32 %v123_v22, %v111_v34 }
 0x20f   :  { %113 = vst.msk [vmem:[%s206_s5] sm:$0xff] %vm88_vm2, %v112_v35 }

</bundles_post_ra>
